<compile_context>
chip_gen: v6e
topology: v6e:2x2x1
jax: 0.10.0
libtpu: 0.0.40
codegen_flags: <defaults>
</compile_context>

<pallas_src>
import functools

import jax
import jax.numpy as jnp
from jax.experimental import pallas as pl
from jax.experimental.pallas import tpu as pltpu

# ---------------- configuration (mirrors MolecularCrystalGraphModel.__init__ args) ----------------
INPUT_NODE_DIM = 4          # input_node_dim
NUM_MOL_FEATS = 4           # num_mol_feats (>0 -> mol_fc exists)
CONCAT_MOL_TO_NODE = False  # concat_mol_to_node_dim
CONCAT_MOL_IND_TO_NODE = False  # concat_mol_ind_to_node_dim
EMBEDDING_DIM = 32          # graph_config.embedding_dim
NUM_CONVS = 0               # graph_config: zero interaction blocks -> radial graph never built
FC_LAYERS = 2               # fc_config.num_layers
FC_HIDDEN = 32              # fc_config.hidden_dim
OUTPUT_DIM = 8              # output_dim (!= graph_output_dim -> output_fc = Linear(bias=False))
OUT_LANES = 128             # lane-dense width of the final output slab (multiple of 128)


def _gelu(y):
    # TODO(synk): torch F.gelu default is the exact erf form; tanh approximation used here.
    c = 0.7978845608028654  # sqrt(2/pi)
    return 0.5 * y * (1.0 + jnp.tanh(c * (y + 0.044715 * y * y * y)))


# ---------------------------------- fused Pallas kernel ----------------------------------
def _fused_forward_kernel(seg_row_ref, seg_col_ref, x_ref, mol_x_ref,
                          embed_w_ref, embed_b_ref, pool_t_ref, pool_b_ref,
                          mol_fc_w_ref, mol_fc_b_ref,
                          mlp_in_wg_ref, mlp_in_wm_ref, mlp_in_b_ref,
                          *rest, fc_layers):
    """One tile (group of molecules): all refs are full VMEM blocks; weights are grid-invariant."""
    mlp_refs = rest[:2 * fc_layers]          # (w, b) per hidden layer
    out_w_ref = rest[2 * fc_layers]          # (FC_HIDDEN, OUT_LANES), zero-padded
    out_ref = rest[2 * fc_layers + 1]        # (mols_per_tile, OUT_LANES)
    f32 = jnp.float32

    # ---- graph_net: node embedding Linear + GELU (zero interaction blocks) ----
    h = _gelu(jnp.dot(x_ref[...], embed_w_ref[...], preferred_element_type=f32)
              + embed_b_ref[...])                                 # (N, E)
    n_nodes = h.shape[0]
    n_mols = out_ref.shape[0]

    # ---- segment one-hot masks built in-kernel from the tiny index vectors ----
    seg_row = seg_row_ref[...]                                    # (1, N) int32
    seg_col = seg_col_ref[...]                                    # (N, 1) int32
    row_ids = jax.lax.broadcasted_iota(jnp.int32, (n_mols, n_nodes), 0)
    col_ids = jax.lax.broadcasted_iota(jnp.int32, (n_nodes, n_mols), 1)
    mask_mn = jnp.where(seg_row == row_ids, 1.0, 0.0)             # (M, N): segment-sum (scatter)
    mask_nm = jnp.where(seg_col == col_ids, 1.0, 0.0)             # (N, M): gather back to nodes

    # ---- AugSoftmaxAggregation(temperature, learned bias) ----
    # Per-segment softmax is invariant to any per-segment shift, so the stabilizer is the
    # per-segment MEAN (pure MXU matmuls, no serial per-segment loop / 3-D intermediates).
    # Denominators are >= segment count >= 1 (Jensen), and the exponent is clamped as a safety net.
    t = pool_t_ref[...]
    b = pool_b_ref[...]
    xt = h * t                                                    # (N, E)
    cnt = jnp.maximum(jnp.sum(mask_mn, axis=-1, keepdims=True), 1.0)               # (M, 1)
    seg_shift = (jnp.dot(mask_mn, xt, preferred_element_type=f32)
                 * pl.reciprocal(cnt, approx=True))               # (M, E) per-segment mean
    node_shift = jnp.dot(mask_nm, seg_shift, preferred_element_type=f32)           # (N, E)
    e = jnp.exp(jnp.minimum(xt - node_shift, 60.0))               # clamp: never overflows
    denom = jnp.dot(mask_mn, e, preferred_element_type=f32)       # (M, E) segment sums (>= 1)
    back = jnp.dot(mask_nm, denom, preferred_element_type=f32)    # (N, E) denominator per node
    alpha = e * pl.reciprocal(back, approx=True)                  # per-segment softmax weights
    pooled = jnp.dot(mask_mn, h * (alpha + b), preferred_element_type=f32)          # (M, E)

    # ---- mol_fc + scalarMLP head (concat expressed as a split matmul) ----
    mol_h = (jnp.dot(mol_x_ref[...], mol_fc_w_ref[...], preferred_element_type=f32)
             + mol_fc_b_ref[...])                                 # (M, F)
    g = (jnp.dot(pooled, mlp_in_wg_ref[...], preferred_element_type=f32)
         + jnp.dot(mol_h, mlp_in_wm_ref[...], preferred_element_type=f32)
         + mlp_in_b_ref[...])
    g = _gelu(g)
    for layer in range(fc_layers):
        g = _gelu(jnp.dot(g, mlp_refs[2 * layer][...], preferred_element_type=f32)
                  + mlp_refs[2 * layer + 1][...])
    # TODO(synk): scalarMLP norm/dropout/residual details not reproduced (config: norm=None, dropout=0).

    # ---- output_fc (bias-free), lane-dense 128-wide store ----
    out_ref[...] = jnp.dot(g, out_w_ref[...], preferred_element_type=f32).astype(out_ref.dtype)


def _fused_forward(params, seg_row, seg_col, x_t, mol_x_t):
    num_tiles, nodes_per_tile, node_dim = x_t.shape
    mols_per_tile = mol_x_t.shape[1]
    mol_dim = mol_x_t.shape[2]

    weights = [params["gnn_embed_w"], params["gnn_embed_b"],
               params["pool_t"], params["pool_b"],
               params["mol_fc_w"], params["mol_fc_b"],
               params["mlp_in_wg"], params["mlp_in_wm"], params["mlp_in_b"]]
    for layer in range(FC_LAYERS):
        weights += [params[f"mlp_{layer}_w"], params[f"mlp_{layer}_b"]]
    weights.append(params["out_w_padded"])

    def tile_spec(shape):
        # Per-tile block: leading (tile) axis squeezed away, rest is the full per-tile slab.
        return pl.BlockSpec((None,) + shape, lambda i: (i,) + (0,) * len(shape))

    def resident_spec(arr):
        # Full-array block with a constant index_map -> weight stays VMEM-resident across steps.
        nd = arr.ndim
        return pl.BlockSpec(arr.shape, lambda i: (0,) * nd)

    in_specs = ([tile_spec((1, nodes_per_tile)),          # seg_row
                 tile_spec((nodes_per_tile, 1)),          # seg_col
                 tile_spec((nodes_per_tile, node_dim)),   # x
                 tile_spec((mols_per_tile, mol_dim))]     # mol_x
                + [resident_spec(w) for w in weights])

    return pl.pallas_call(
        functools.partial(_fused_forward_kernel, fc_layers=FC_LAYERS),
        grid=(num_tiles,),
        in_specs=in_specs,
        out_specs=tile_spec((mols_per_tile, OUT_LANES)),
        out_shape=jax.ShapeDtypeStruct((num_tiles, mols_per_tile, OUT_LANES), jnp.float32),
        compiler_params=pltpu.CompilerParams(dimension_semantics=("parallel",)),
    )(seg_row, seg_col, x_t, mol_x_t, *weights)


# ---------------------------------- parameters ----------------------------------
def _linear_init(key, fan_in, fan_out, bias=True):
    kw, kb = jax.random.split(key)
    bound = 1.0 / jnp.sqrt(jnp.float32(fan_in))
    w = jax.random.uniform(kw, (fan_in, fan_out), jnp.float32, -bound, bound)
    if bias:
        b = jax.random.uniform(kb, (1, fan_out), jnp.float32, -bound, bound)
    else:
        b = jnp.zeros((1, fan_out), jnp.float32)
    return w, b


def init_params(seed=5):
    key = jax.random.PRNGKey(seed)
    ks = jax.random.split(key, 4 + FC_LAYERS)
    p = {}
    gnn_in = (INPUT_NODE_DIM
              + (NUM_MOL_FEATS if CONCAT_MOL_TO_NODE else 0)
              + (2 if CONCAT_MOL_IND_TO_NODE else 0))
    # graph_net node embedding
    p["gnn_embed_w"], p["gnn_embed_b"] = _linear_init(ks[0], gnn_in, EMBEDDING_DIM)
    # AugSoftmaxAggregation(temperature=1, learn=True, bias=0.1, channels=embedding_dim)
    p["pool_t"] = jnp.ones((1, EMBEDDING_DIM), jnp.float32)
    p["pool_b"] = jnp.full((1, EMBEDDING_DIM), 0.1, jnp.float32)
    # mol_fc: Linear(num_mol_feats, num_mol_feats)
    p["mol_fc_w"], p["mol_fc_b"] = _linear_init(ks[1], NUM_MOL_FEATS, NUM_MOL_FEATS)
    # gnn_mlp (scalarMLP) input layer: (embedding_dim + num_mol_feats) -> hidden_dim
    p["mlp_in_w"], p["mlp_in_b"] = _linear_init(ks[2], EMBEDDING_DIM + NUM_MOL_FEATS, FC_HIDDEN)
    # concat([pooled, mol_h]) @ W  ==  pooled @ W[:E] + mol_h @ W[E:]  (avoids in-kernel concat)
    p["mlp_in_wg"] = p["mlp_in_w"][:EMBEDDING_DIM]
    p["mlp_in_wm"] = p["mlp_in_w"][EMBEDDING_DIM:]
    for layer in range(FC_LAYERS):
        p[f"mlp_{layer}_w"], p[f"mlp_{layer}_b"] = _linear_init(ks[3 + layer], FC_HIDDEN, FC_HIDDEN)
    # output_fc: Linear(hidden_dim, output_dim, bias=False); zero-padded to 128 lanes for the store
    out_w, _ = _linear_init(ks[3 + FC_LAYERS], FC_HIDDEN, OUTPUT_DIM, bias=False)
    p["out_w"] = out_w
    p["out_w_padded"] = jnp.zeros((FC_HIDDEN, OUT_LANES), jnp.float32).at[:, :OUTPUT_DIM].set(out_w)
    return p


# ---------------------------------- forward (jitted, no host syncs) ----------------------------------
@functools.partial(jax.jit, static_argnames=("num_graphs", "mols_per_tile"))
def molecular_crystal_graph_forward(params, x, pos, batch, ptr, mol_x, num_graphs,
                                    aux_ind, mol_ind, mols_per_tile, edges_dict=None):
    # NUM_CONVS == 0 and return_dists=False => build_radial_graph is skipped entirely.
    # TODO(synk): build_radial_graph + MolCrystalScalarGNN interaction (message-passing) blocks are
    # not implemented (zero interaction blocks); pooling uses the per-molecule segment id (mol_ind)
    # in place of edges_dict['inside_batch'].

    # append_init_node_features
    if x.ndim == 1:
        x = x[:, None]
    if CONCAT_MOL_IND_TO_NODE:
        x = jnp.concatenate([x, mol_ind[:, None].astype(x.dtype),
                             aux_ind[:, None].astype(x.dtype)], axis=-1)
    if CONCAT_MOL_TO_NODE:
        nodes_per_graph = jnp.diff(ptr)
        x = jnp.concatenate(
            [x, jnp.repeat(mol_x, nodes_per_graph, axis=0, total_repeat_length=x.shape[0])],
            axis=-1)

    num_nodes, node_dim = x.shape
    num_mols = mol_x.shape[0]
    assert num_mols % mols_per_tile == 0, (num_mols, mols_per_tile)
    num_tiles = num_mols // mols_per_tile
    assert num_nodes % num_tiles == 0, (num_nodes, num_tiles)
    nodes_per_tile = num_nodes // num_tiles
    # TODO(synk): assumes molecules are contiguous, equal-node-count blocks so the batch reshapes
    # evenly into (num_tiles, nodes_per_tile); ragged clusters need padding + pl.BoundedSlice.

    # 0-based, tile-local segment ids (handles 1-indexed mol_ind); no device->host sync anywhere.
    seg = (mol_ind - jnp.min(mol_ind)).astype(jnp.int32) % mols_per_tile
    seg_row = seg.reshape(num_tiles, 1, nodes_per_tile)   # (T, 1, N) for the (M, N) scatter mask
    seg_col = seg.reshape(num_tiles, nodes_per_tile, 1)   # (T, N, 1) for the (N, M) gather mask
    x_t = x.astype(jnp.float32).reshape(num_tiles, nodes_per_tile, node_dim)
    mol_x_t = mol_x.astype(jnp.float32).reshape(num_tiles, mols_per_tile, mol_x.shape[-1])

    out = _fused_forward(params, seg_row, seg_col, x_t, mol_x_t)   # (T, M, OUT_LANES)
    return out[:, :, :OUTPUT_DIM].reshape(num_mols, OUTPUT_DIM)    # strip lane padding


# ---------------------------------- pure-JAX reference (for validation) ----------------------------------
def reference_forward(params, x, mol_x, mol_ind, num_segments):
    if x.ndim == 1:
        x = x[:, None]
    h = _gelu(x @ params["gnn_embed_w"] + params["gnn_embed_b"])
    index = mol_ind - jnp.min(mol_ind)
    xt = h * params["pool_t"]
    seg_max = jax.ops.segment_max(xt, index, num_segments=num_segments)
    e = jnp.exp(xt - seg_max[index])
    denom = jax.ops.segment_sum(e, index, num_segments=num_segments)
    alpha = e / denom[index]
    pooled = jax.ops.segment_sum(h * (alpha + params["pool_b"]), index, num_segments=num_segments)
    mol_h = mol_x @ params["mol_fc_w"] + params["mol_fc_b"]
    g = jnp.concatenate([pooled, mol_h], axis=-1)
    g = _gelu(g @ params["mlp_in_w"] + params["mlp_in_b"])
    for layer in range(FC_LAYERS):
        g = _gelu(g @ params[f"mlp_{layer}_w"] + params[f"mlp_{layer}_b"])
    return g @ params["out_w"]


# ---------------------------------- main ----------------------------------
if __name__ == "__main__":
    key = jax.random.PRNGKey(0)
    kx, kp, kmx = jax.random.split(key, 3)

    NODES_PER_MOL = 6
    MOLS_PER_TILE = 8          # molecules (pooled segments) handled per grid step
    NUM_TILES = 4              # grid length; "parallel" -> shards across v7x's two TensorCores
    NUM_MOLS = MOLS_PER_TILE * NUM_TILES
    NUM_NODES = NODES_PER_MOL * NUM_MOLS
    NUM_GRAPHS = 1  # one crystal cluster sample per batch

    x = jax.random.normal(kx, (NUM_NODES, INPUT_NODE_DIM), jnp.float32)
    pos = jax.random.normal(kp, (NUM_NODES, 3), jnp.float32) * 3.0
    mol_x = jax.random.normal(kmx, (NUM_MOLS, NUM_MOL_FEATS), jnp.float32)
    mol_ind = jnp.repeat(jnp.arange(1, NUM_MOLS + 1, dtype=jnp.int32), NODES_PER_MOL)  # 1-indexed
    batch = jnp.zeros((NUM_NODES,), jnp.int32)
    aux_ind = jnp.zeros((NUM_NODES,), jnp.int32)
    ptr = jnp.array([0, NUM_NODES], dtype=jnp.int32)

    params = init_params(seed=5)

    out = molecular_crystal_graph_forward(
        params, x, pos, batch, ptr, mol_x,
        num_graphs=NUM_GRAPHS, aux_ind=aux_ind, mol_ind=mol_ind,
        mols_per_tile=MOLS_PER_TILE)
    out = jax.block_until_ready(out)

    assert out.shape == (NUM_MOLS, OUTPUT_DIM), out.shape
    assert bool(jnp.all(jnp.isfinite(out)))

    ref = reference_forward(params, x, mol_x, mol_ind, NUM_MOLS)
    assert bool(jnp.allclose(out, ref, rtol=1e-2, atol=1e-2)), float(jnp.max(jnp.abs(out - ref)))

    print("KERNEL_OK")
</pallas_src>

<mosaic_0001>
module attributes {stable_mosaic.version = 11 : i64} {
  func.func @_fused_forward_kernel(%arg0: i32, %arg1: memref<1x1x48xi32, #tpu.memory_space<vmem>>, %arg2: memref<1x48x1xi32, #tpu.memory_space<vmem>>, %arg3: memref<1x48x4xf32, #tpu.memory_space<vmem>>, %arg4: memref<1x8x4xf32, #tpu.memory_space<vmem>>, %arg5: memref<4x32xf32, #tpu.memory_space<vmem>>, %arg6: memref<1x32xf32, #tpu.memory_space<vmem>>, %arg7: memref<1x32xf32, #tpu.memory_space<vmem>>, %arg8: memref<1x32xf32, #tpu.memory_space<vmem>>, %arg9: memref<4x4xf32, #tpu.memory_space<vmem>>, %arg10: memref<1x4xf32, #tpu.memory_space<vmem>>, %arg11: memref<32x32xf32, #tpu.memory_space<vmem>>, %arg12: memref<4x32xf32, #tpu.memory_space<vmem>>, %arg13: memref<1x32xf32, #tpu.memory_space<vmem>>, %arg14: memref<32x32xf32, #tpu.memory_space<vmem>>, %arg15: memref<1x32xf32, #tpu.memory_space<vmem>>, %arg16: memref<32x32xf32, #tpu.memory_space<vmem>>, %arg17: memref<1x32xf32, #tpu.memory_space<vmem>>, %arg18: memref<32x128xf32, #tpu.memory_space<vmem>>, %arg19: memref<1x8x128xf32, #tpu.memory_space<vmem>>) attributes {dimension_semantics = [#tpu.dimension_semantics<parallel>], iteration_bounds = array<i64: 4>, scalar_prefetch = 0 : i64, scratch_operands = 0 : i64, tpu.core_type = #tpu.core_type<tc>, window_params = [{transform_indices = @transform_0, window_bounds = array<i64: 1, 1, 48>}, {transform_indices = @transform_1, window_bounds = array<i64: 1, 48, 1>}, {transform_indices = @transform_2, window_bounds = array<i64: 1, 48, 4>}, {transform_indices = @transform_3, window_bounds = array<i64: 1, 8, 4>}, {pipeline_mode = #tpu.pipeline_mode<synchronous>, transform_indices = @transform_4, window_bounds = array<i64: 4, 32>}, {pipeline_mode = #tpu.pipeline_mode<synchronous>, transform_indices = @transform_5, window_bounds = array<i64: 1, 32>}, {pipeline_mode = #tpu.pipeline_mode<synchronous>, transform_indices = @transform_6, window_bounds = array<i64: 1, 32>}, {pipeline_mode = #tpu.pipeline_mode<synchronous>, transform_indices = @transform_7, window_bounds = array<i64: 1, 32>}, {pipeline_mode = #tpu.pipeline_mode<synchronous>, transform_indices = @transform_8, window_bounds = array<i64: 4, 4>}, {pipeline_mode = #tpu.pipeline_mode<synchronous>, transform_indices = @transform_9, window_bounds = array<i64: 1, 4>}, {pipeline_mode = #tpu.pipeline_mode<synchronous>, transform_indices = @transform_10, window_bounds = array<i64: 32, 32>}, {pipeline_mode = #tpu.pipeline_mode<synchronous>, transform_indices = @transform_11, window_bounds = array<i64: 4, 32>}, {pipeline_mode = #tpu.pipeline_mode<synchronous>, transform_indices = @transform_12, window_bounds = array<i64: 1, 32>}, {pipeline_mode = #tpu.pipeline_mode<synchronous>, transform_indices = @transform_13, window_bounds = array<i64: 32, 32>}, {pipeline_mode = #tpu.pipeline_mode<synchronous>, transform_indices = @transform_14, window_bounds = array<i64: 1, 32>}, {pipeline_mode = #tpu.pipeline_mode<synchronous>, transform_indices = @transform_15, window_bounds = array<i64: 32, 32>}, {pipeline_mode = #tpu.pipeline_mode<synchronous>, transform_indices = @transform_16, window_bounds = array<i64: 1, 32>}, {pipeline_mode = #tpu.pipeline_mode<synchronous>, transform_indices = @transform_17, window_bounds = array<i64: 32, 128>}, {transform_indices = @transform_18, window_bounds = array<i64: 1, 8, 128>}]} {
    %c0 = arith.constant 0 : index
    %c0_0 = arith.constant 0 : index
    %c0_1 = arith.constant 0 : index
    %0 = vector.load %arg3[%c0, %c0_0, %c0_1] : memref<1x48x4xf32, #tpu.memory_space<vmem>>, vector<1x48x4xf32>
    %1 = vector.shape_cast %0 : vector<1x48x4xf32> to vector<48x4xf32>
    %c0_2 = arith.constant 0 : index
    %c0_3 = arith.constant 0 : index
    %2 = vector.load %arg5[%c0_2, %c0_3] : memref<4x32xf32, #tpu.memory_space<vmem>>, vector<4x32xf32>
    %cst = arith.constant dense<0.000000e+00> : vector<48x32xf32>
    %3 = tpu.matmul %1, %2, %cst {dimension_numbers = #tpu.dot_dimension_numbers<[1], [0], [0], [1], [0, 0, 1, 1], [], []>} : vector<48x4xf32>, vector<4x32xf32>, vector<48x32xf32> -> vector<48x32xf32>
    %c0_4 = arith.constant 0 : index
    %c0_5 = arith.constant 0 : index
    %4 = vector.load %arg6[%c0_4, %c0_5] : memref<1x32xf32, #tpu.memory_space<vmem>>, vector<1x32xf32>
    %5 = vector.broadcast %4 : vector<1x32xf32> to vector<48x32xf32>
    %6 = arith.addf %3, %5 : vector<48x32xf32>
    %cst_6 = arith.constant 5.000000e-01 : f32
    %7 = vector.broadcast %cst_6 : f32 to vector<48x32xf32>
    %8 = arith.mulf %7, %6 : vector<48x32xf32>
    %cst_7 = arith.constant 4.471500e-02 : f32
    %9 = vector.broadcast %cst_7 : f32 to vector<48x32xf32>
    %10 = arith.mulf %9, %6 : vector<48x32xf32>
    %11 = arith.mulf %10, %6 : vector<48x32xf32>
    %12 = arith.mulf %11, %6 : vector<48x32xf32>
    %13 = arith.addf %6, %12 : vector<48x32xf32>
    %cst_8 = arith.constant 0.797884583 : f32
    %14 = vector.broadcast %cst_8 : f32 to vector<48x32xf32>
    %15 = arith.mulf %14, %13 : vector<48x32xf32>
    %16 = math.tanh %15 : vector<48x32xf32>
    %cst_9 = arith.constant 1.000000e+00 : f32
    %17 = vector.broadcast %cst_9 : f32 to vector<48x32xf32>
    %18 = arith.addf %17, %16 : vector<48x32xf32>
    %19 = arith.mulf %8, %18 : vector<48x32xf32>
    %c0_10 = arith.constant 0 : index
    %c0_11 = arith.constant 0 : index
    %c0_12 = arith.constant 0 : index
    %20 = vector.load %arg1[%c0_10, %c0_11, %c0_12] : memref<1x1x48xi32, #tpu.memory_space<vmem>>, vector<1x1x48xi32>
    %21 = vector.shape_cast %20 : vector<1x1x48xi32> to vector<1x48xi32>
    %c0_13 = arith.constant 0 : index
    %c0_14 = arith.constant 0 : index
    %c0_15 = arith.constant 0 : index
    %22 = vector.load %arg2[%c0_13, %c0_14, %c0_15] : memref<1x48x1xi32, #tpu.memory_space<vmem>>, vector<1x48x1xi32>
    %23 = vector.shape_cast %22 : vector<1x48x1xi32> to vector<48x1xi32>
    %24 = tpu.iota {dimensions = array<i32: 0>} : vector<8x48xi32>
    %25 = tpu.iota {dimensions = array<i32: 1>} : vector<48x8xi32>
    %26 = vector.broadcast %21 : vector<1x48xi32> to vector<8x48xi32>
    %27 = arith.cmpi eq, %26, %24 : vector<8x48xi32>
    %cst_16 = arith.constant 1.000000e+00 : f32
    %cst_17 = arith.constant 0.000000e+00 : f32
    %28 = vector.broadcast %cst_16 : f32 to vector<8x48xf32>
    %29 = vector.broadcast %cst_17 : f32 to vector<8x48xf32>
    %30 = arith.select %27, %28, %29 : vector<8x48xi1>, vector<8x48xf32>
    %31 = vector.broadcast %23 : vector<48x1xi32> to vector<48x8xi32>
    %32 = arith.cmpi eq, %31, %25 : vector<48x8xi32>
    %cst_18 = arith.constant 1.000000e+00 : f32
    %cst_19 = arith.constant 0.000000e+00 : f32
    %33 = vector.broadcast %cst_18 : f32 to vector<48x8xf32>
    %34 = vector.broadcast %cst_19 : f32 to vector<48x8xf32>
    %35 = arith.select %32, %33, %34 : vector<48x8xi1>, vector<48x8xf32>
    %c0_20 = arith.constant 0 : index
    %c0_21 = arith.constant 0 : index
    %36 = vector.load %arg7[%c0_20, %c0_21] : memref<1x32xf32, #tpu.memory_space<vmem>>, vector<1x32xf32>
    %c0_22 = arith.constant 0 : index
    %c0_23 = arith.constant 0 : index
    %37 = vector.load %arg8[%c0_22, %c0_23] : memref<1x32xf32, #tpu.memory_space<vmem>>, vector<1x32xf32>
    %38 = vector.broadcast %36 : vector<1x32xf32> to vector<48x32xf32>
    %39 = arith.mulf %19, %38 : vector<48x32xf32>
    %cst_24 = arith.constant dense<0.000000e+00> : vector<8xf32>
    %40 = vector.multi_reduction <add>, %30, %cst_24 [1] : vector<8x48xf32> to vector<8xf32>
    %41 = vector.shape_cast %40 : vector<8xf32> to vector<8x1xf32>
    %cst_25 = arith.constant 1.000000e+00 : f32
    %42 = vector.broadcast %cst_25 : f32 to vector<8x1xf32>
    %43 = arith.maximumf %41, %42 : vector<8x1xf32>
    %cst_26 = arith.constant dense<0.000000e+00> : vector<8x32xf32>
    %44 = tpu.matmul %30, %39, %cst_26 {dimension_numbers = #tpu.dot_dimension_numbers<[1], [0], [0], [1], [0, 0, 1, 1], [], []>} : vector<8x48xf32>, vector<48x32xf32>, vector<8x32xf32> -> vector<8x32xf32>
    %45 = tpu.reciprocal %43 {approx = true} : vector<8x1xf32> -> vector<8x1xf32>
    %46 = vector.broadcast %45 : vector<8x1xf32> to vector<8x32xf32>
    %47 = arith.mulf %44, %46 : vector<8x32xf32>
    %cst_27 = arith.constant dense<0.000000e+00> : vector<48x32xf32>
    %48 = tpu.matmul %35, %47, %cst_27 {dimension_numbers = #tpu.dot_dimension_numbers<[1], [0], [0], [1], [0, 0, 1, 1], [], []>} : vector<48x8xf32>, vector<8x32xf32>, vector<48x32xf32> -> vector<48x32xf32>
    %49 = arith.subf %39, %48 : vector<48x32xf32>
    %cst_28 = arith.constant 6.000000e+01 : f32
    %50 = vector.broadcast %cst_28 : f32 to vector<48x32xf32>
    %51 = arith.minimumf %49, %50 : vector<48x32xf32>
    %52 = math.exp %51 : vector<48x32xf32>
    %cst_29 = arith.constant dense<0.000000e+00> : vector<8x32xf32>
    %53 = tpu.matmul %30, %52, %cst_29 {dimension_numbers = #tpu.dot_dimension_numbers<[1], [0], [0], [1], [0, 0, 1, 1], [], []>} : vector<8x48xf32>, vector<48x32xf32>, vector<8x32xf32> -> vector<8x32xf32>
    %cst_30 = arith.constant dense<0.000000e+00> : vector<48x32xf32>
    %54 = tpu.matmul %35, %53, %cst_30 {dimension_numbers = #tpu.dot_dimension_numbers<[1], [0], [0], [1], [0, 0, 1, 1], [], []>} : vector<48x8xf32>, vector<8x32xf32>, vector<48x32xf32> -> vector<48x32xf32>
    %55 = tpu.reciprocal %54 {approx = true} : vector<48x32xf32> -> vector<48x32xf32>
    %56 = arith.mulf %52, %55 : vector<48x32xf32>
    %57 = vector.broadcast %37 : vector<1x32xf32> to vector<48x32xf32>
    %58 = arith.addf %56, %57 : vector<48x32xf32>
    %59 = arith.mulf %19, %58 : vector<48x32xf32>
    %cst_31 = arith.constant dense<0.000000e+00> : vector<8x32xf32>
    %60 = tpu.matmul %30, %59, %cst_31 {dimension_numbers = #tpu.dot_dimension_numbers<[1], [0], [0], [1], [0, 0, 1, 1], [], []>} : vector<8x48xf32>, vector<48x32xf32>, vector<8x32xf32> -> vector<8x32xf32>
    %c0_32 = arith.constant 0 : index
    %c0_33 = arith.constant 0 : index
    %c0_34 = arith.constant 0 : index
    %61 = vector.load %arg4[%c0_32, %c0_33, %c0_34] : memref<1x8x4xf32, #tpu.memory_space<vmem>>, vector<1x8x4xf32>
    %62 = vector.shape_cast %61 : vector<1x8x4xf32> to vector<8x4xf32>
    %c0_35 = arith.constant 0 : index
    %c0_36 = arith.constant 0 : index
    %63 = vector.load %arg9[%c0_35, %c0_36] : memref<4x4xf32, #tpu.memory_space<vmem>>, vector<4x4xf32>
    %cst_37 = arith.constant dense<0.000000e+00> : vector<8x4xf32>
    %64 = tpu.matmul %62, %63, %cst_37 {dimension_numbers = #tpu.dot_dimension_numbers<[1], [0], [0], [1], [0, 0, 1, 1], [], []>} : vector<8x4xf32>, vector<4x4xf32>, vector<8x4xf32> -> vector<8x4xf32>
    %c0_38 = arith.constant 0 : index
    %c0_39 = arith.constant 0 : index
    %65 = vector.load %arg10[%c0_38, %c0_39] : memref<1x4xf32, #tpu.memory_space<vmem>>, vector<1x4xf32>
    %66 = vector.broadcast %65 : vector<1x4xf32> to vector<8x4xf32>
    %67 = arith.addf %64, %66 : vector<8x4xf32>
    %c0_40 = arith.constant 0 : index
    %c0_41 = arith.constant 0 : index
    %68 = vector.load %arg11[%c0_40, %c0_41] : memref<32x32xf32, #tpu.memory_space<vmem>>, vector<32x32xf32>
    %cst_42 = arith.constant dense<0.000000e+00> : vector<8x32xf32>
    %69 = tpu.matmul %60, %68, %cst_42 {dimension_numbers = #tpu.dot_dimension_numbers<[1], [0], [0], [1], [0, 0, 1, 1], [], []>} : vector<8x32xf32>, vector<32x32xf32>, vector<8x32xf32> -> vector<8x32xf32>
    %c0_43 = arith.constant 0 : index
    %c0_44 = arith.constant 0 : index
    %70 = vector.load %arg12[%c0_43, %c0_44] : memref<4x32xf32, #tpu.memory_space<vmem>>, vector<4x32xf32>
    %cst_45 = arith.constant dense<0.000000e+00> : vector<8x32xf32>
    %71 = tpu.matmul %67, %70, %cst_45 {dimension_numbers = #tpu.dot_dimension_numbers<[1], [0], [0], [1], [0, 0, 1, 1], [], []>} : vector<8x4xf32>, vector<4x32xf32>, vector<8x32xf32> -> vector<8x32xf32>
    %72 = arith.addf %69, %71 : vector<8x32xf32>
    %c0_46 = arith.constant 0 : index
    %c0_47 = arith.constant 0 : index
    %73 = vector.load %arg13[%c0_46, %c0_47] : memref<1x32xf32, #tpu.memory_space<vmem>>, vector<1x32xf32>
    %74 = vector.broadcast %73 : vector<1x32xf32> to vector<8x32xf32>
    %75 = arith.addf %72, %74 : vector<8x32xf32>
    %cst_48 = arith.constant 5.000000e-01 : f32
    %76 = vector.broadcast %cst_48 : f32 to vector<8x32xf32>
    %77 = arith.mulf %76, %75 : vector<8x32xf32>
    %cst_49 = arith.constant 4.471500e-02 : f32
    %78 = vector.broadcast %cst_49 : f32 to vector<8x32xf32>
    %79 = arith.mulf %78, %75 : vector<8x32xf32>
    %80 = arith.mulf %79, %75 : vector<8x32xf32>
    %81 = arith.mulf %80, %75 : vector<8x32xf32>
    %82 = arith.addf %75, %81 : vector<8x32xf32>
    %cst_50 = arith.constant 0.797884583 : f32
    %83 = vector.broadcast %cst_50 : f32 to vector<8x32xf32>
    %84 = arith.mulf %83, %82 : vector<8x32xf32>
    %85 = math.tanh %84 : vector<8x32xf32>
    %cst_51 = arith.constant 1.000000e+00 : f32
    %86 = vector.broadcast %cst_51 : f32 to vector<8x32xf32>
    %87 = arith.addf %86, %85 : vector<8x32xf32>
    %88 = arith.mulf %77, %87 : vector<8x32xf32>
    %c0_52 = arith.constant 0 : index
    %c0_53 = arith.constant 0 : index
    %89 = vector.load %arg14[%c0_52, %c0_53] : memref<32x32xf32, #tpu.memory_space<vmem>>, vector<32x32xf32>
    %cst_54 = arith.constant dense<0.000000e+00> : vector<8x32xf32>
    %90 = tpu.matmul %88, %89, %cst_54 {dimension_numbers = #tpu.dot_dimension_numbers<[1], [0], [0], [1], [0, 0, 1, 1], [], []>} : vector<8x32xf32>, vector<32x32xf32>, vector<8x32xf32> -> vector<8x32xf32>
    %c0_55 = arith.constant 0 : index
    %c0_56 = arith.constant 0 : index
    %91 = vector.load %arg15[%c0_55, %c0_56] : memref<1x32xf32, #tpu.memory_space<vmem>>, vector<1x32xf32>
    %92 = vector.broadcast %91 : vector<1x32xf32> to vector<8x32xf32>
    %93 = arith.addf %90, %92 : vector<8x32xf32>
    %cst_57 = arith.constant 5.000000e-01 : f32
    %94 = vector.broadcast %cst_57 : f32 to vector<8x32xf32>
    %95 = arith.mulf %94, %93 : vector<8x32xf32>
    %cst_58 = arith.constant 4.471500e-02 : f32
    %96 = vector.broadcast %cst_58 : f32 to vector<8x32xf32>
    %97 = arith.mulf %96, %93 : vector<8x32xf32>
    %98 = arith.mulf %97, %93 : vector<8x32xf32>
    %99 = arith.mulf %98, %93 : vector<8x32xf32>
    %100 = arith.addf %93, %99 : vector<8x32xf32>
    %cst_59 = arith.constant 0.797884583 : f32
    %101 = vector.broadcast %cst_59 : f32 to vector<8x32xf32>
    %102 = arith.mulf %101, %100 : vector<8x32xf32>
    %103 = math.tanh %102 : vector<8x32xf32>
    %cst_60 = arith.constant 1.000000e+00 : f32
    %104 = vector.broadcast %cst_60 : f32 to vector<8x32xf32>
    %105 = arith.addf %104, %103 : vector<8x32xf32>
    %106 = arith.mulf %95, %105 : vector<8x32xf32>
    %c0_61 = arith.constant 0 : index
    %c0_62 = arith.constant 0 : index
    %107 = vector.load %arg16[%c0_61, %c0_62] : memref<32x32xf32, #tpu.memory_space<vmem>>, vector<32x32xf32>
    %cst_63 = arith.constant dense<0.000000e+00> : vector<8x32xf32>
    %108 = tpu.matmul %106, %107, %cst_63 {dimension_numbers = #tpu.dot_dimension_numbers<[1], [0], [0], [1], [0, 0, 1, 1], [], []>} : vector<8x32xf32>, vector<32x32xf32>, vector<8x32xf32> -> vector<8x32xf32>
    %c0_64 = arith.constant 0 : index
    %c0_65 = arith.constant 0 : index
    %109 = vector.load %arg17[%c0_64, %c0_65] : memref<1x32xf32, #tpu.memory_space<vmem>>, vector<1x32xf32>
    %110 = vector.broadcast %109 : vector<1x32xf32> to vector<8x32xf32>
    %111 = arith.addf %108, %110 : vector<8x32xf32>
    %cst_66 = arith.constant 5.000000e-01 : f32
    %112 = vector.broadcast %cst_66 : f32 to vector<8x32xf32>
    %113 = arith.mulf %112, %111 : vector<8x32xf32>
    %cst_67 = arith.constant 4.471500e-02 : f32
    %114 = vector.broadcast %cst_67 : f32 to vector<8x32xf32>
    %115 = arith.mulf %114, %111 : vector<8x32xf32>
    %116 = arith.mulf %115, %111 : vector<8x32xf32>
    %117 = arith.mulf %116, %111 : vector<8x32xf32>
    %118 = arith.addf %111, %117 : vector<8x32xf32>
    %cst_68 = arith.constant 0.797884583 : f32
    %119 = vector.broadcast %cst_68 : f32 to vector<8x32xf32>
    %120 = arith.mulf %119, %118 : vector<8x32xf32>
    %121 = math.tanh %120 : vector<8x32xf32>
    %cst_69 = arith.constant 1.000000e+00 : f32
    %122 = vector.broadcast %cst_69 : f32 to vector<8x32xf32>
    %123 = arith.addf %122, %121 : vector<8x32xf32>
    %124 = arith.mulf %113, %123 : vector<8x32xf32>
    %c0_70 = arith.constant 0 : index
    %c0_71 = arith.constant 0 : index
    %125 = vector.load %arg18[%c0_70, %c0_71] : memref<32x128xf32, #tpu.memory_space<vmem>>, vector<32x128xf32>
    %cst_72 = arith.constant dense<0.000000e+00> : vector<8x128xf32>
    %126 = tpu.matmul %124, %125, %cst_72 {dimension_numbers = #tpu.dot_dimension_numbers<[1], [0], [0], [1], [0, 0, 1, 1], [], []>} : vector<8x32xf32>, vector<32x128xf32>, vector<8x128xf32> -> vector<8x128xf32>
    %c0_73 = arith.constant 0 : index
    %c0_74 = arith.constant 0 : index
    %c0_75 = arith.constant 0 : index
    %127 = vector.load %arg19[%c0_73, %c0_74, %c0_75] : memref<1x8x128xf32, #tpu.memory_space<vmem>>, vector<1x8x128xf32>
    %128 = vector.shape_cast %127 : vector<1x8x128xf32> to vector<8x128xf32>
    %129 = vector.shape_cast %126 : vector<8x128xf32> to vector<1x8x128xf32>
    tpu.vector_store %arg19[%c0_73, %c0_74, %c0_75], %129 {strides = array<i32>} : memref<1x8x128xf32, #tpu.memory_space<vmem>>, vector<1x8x128xf32>,
    return
  }
  func.func @transform_0(%arg0: i32) -> (i32, i32, i32) {
    %c0_i32 = arith.constant 0 : i32
    %c0_i32_0 = arith.constant 0 : i32
    %c0_i32_1 = arith.constant 0 : i32
    return %arg0, %c0_i32, %c0_i32_0 : i32, i32, i32
  }
  func.func @transform_1(%arg0: i32) -> (i32, i32, i32) {
    %c0_i32 = arith.constant 0 : i32
    %c0_i32_0 = arith.constant 0 : i32
    %c0_i32_1 = arith.constant 0 : i32
    return %arg0, %c0_i32, %c0_i32_0 : i32, i32, i32
  }
  func.func @transform_2(%arg0: i32) -> (i32, i32, i32) {
    %c0_i32 = arith.constant 0 : i32
    %c0_i32_0 = arith.constant 0 : i32
    %c0_i32_1 = arith.constant 0 : i32
    return %arg0, %c0_i32, %c0_i32_0 : i32, i32, i32
  }
  func.func @transform_3(%arg0: i32) -> (i32, i32, i32) {
    %c0_i32 = arith.constant 0 : i32
    %c0_i32_0 = arith.constant 0 : i32
    %c0_i32_1 = arith.constant 0 : i32
    return %arg0, %c0_i32, %c0_i32_0 : i32, i32, i32
  }
  func.func @transform_4(%arg0: i32) -> (i32, i32) {
    %c0_i32 = arith.constant 0 : i32
    %c0_i32_0 = arith.constant 0 : i32
    %c0_i32_1 = arith.constant 0 : i32
    return %c0_i32, %c0_i32_0 : i32, i32
  }
  func.func @transform_5(%arg0: i32) -> (i32, i32) {
    %c0_i32 = arith.constant 0 : i32
    %c0_i32_0 = arith.constant 0 : i32
    %c0_i32_1 = arith.constant 0 : i32
    return %c0_i32, %c0_i32_0 : i32, i32
  }
  func.func @transform_6(%arg0: i32) -> (i32, i32) {
    %c0_i32 = arith.constant 0 : i32
    %c0_i32_0 = arith.constant 0 : i32
    %c0_i32_1 = arith.constant 0 : i32
    return %c0_i32, %c0_i32_0 : i32, i32
  }
  func.func @transform_7(%arg0: i32) -> (i32, i32) {
    %c0_i32 = arith.constant 0 : i32
    %c0_i32_0 = arith.constant 0 : i32
    %c0_i32_1 = arith.constant 0 : i32
    return %c0_i32, %c0_i32_0 : i32, i32
  }
  func.func @transform_8(%arg0: i32) -> (i32, i32) {
    %c0_i32 = arith.constant 0 : i32
    %c0_i32_0 = arith.constant 0 : i32
    %c0_i32_1 = arith.constant 0 : i32
    return %c0_i32, %c0_i32_0 : i32, i32
  }
  func.func @transform_9(%arg0: i32) -> (i32, i32) {
    %c0_i32 = arith.constant 0 : i32
    %c0_i32_0 = arith.constant 0 : i32
    %c0_i32_1 = arith.constant 0 : i32
    return %c0_i32, %c0_i32_0 : i32, i32
  }
  func.func @transform_10(%arg0: i32) -> (i32, i32) {
    %c0_i32 = arith.constant 0 : i32
    %c0_i32_0 = arith.constant 0 : i32
    %c0_i32_1 = arith.constant 0 : i32
    return %c0_i32, %c0_i32_0 : i32, i32
  }
  func.func @transform_11(%arg0: i32) -> (i32, i32) {
    %c0_i32 = arith.constant 0 : i32
    %c0_i32_0 = arith.constant 0 : i32
    %c0_i32_1 = arith.constant 0 : i32
    return %c0_i32, %c0_i32_0 : i32, i32
  }
  func.func @transform_12(%arg0: i32) -> (i32, i32) {
    %c0_i32 = arith.constant 0 : i32
    %c0_i32_0 = arith.constant 0 : i32
    %c0_i32_1 = arith.constant 0 : i32
    return %c0_i32, %c0_i32_0 : i32, i32
  }
  func.func @transform_13(%arg0: i32) -> (i32, i32) {
    %c0_i32 = arith.constant 0 : i32
    %c0_i32_0 = arith.constant 0 : i32
    %c0_i32_1 = arith.constant 0 : i32
    return %c0_i32, %c0_i32_0 : i32, i32
  }
  func.func @transform_14(%arg0: i32) -> (i32, i32) {
    %c0_i32 = arith.constant 0 : i32
    %c0_i32_0 = arith.constant 0 : i32
    %c0_i32_1 = arith.constant 0 : i32
    return %c0_i32, %c0_i32_0 : i32, i32
  }
  func.func @transform_15(%arg0: i32) -> (i32, i32) {
    %c0_i32 = arith.constant 0 : i32
    %c0_i32_0 = arith.constant 0 : i32
    %c0_i32_1 = arith.constant 0 : i32
    return %c0_i32, %c0_i32_0 : i32, i32
  }
  func.func @transform_16(%arg0: i32) -> (i32, i32) {
    %c0_i32 = arith.constant 0 : i32
    %c0_i32_0 = arith.constant 0 : i32
    %c0_i32_1 = arith.constant 0 : i32
    return %c0_i32, %c0_i32_0 : i32, i32
  }
  func.func @transform_17(%arg0: i32) -> (i32, i32) {
    %c0_i32 = arith.constant 0 : i32
    %c0_i32_0 = arith.constant 0 : i32
    %c0_i32_1 = arith.constant 0 : i32
    return %c0_i32, %c0_i32_0 : i32, i32
  }
  func.func @transform_18(%arg0: i32) -> (i32, i32, i32) {
    %c0_i32 = arith.constant 0 : i32
    %c0_i32_0 = arith.constant 0 : i32
    %c0_i32_1 = arith.constant 0 : i32
    return %arg0, %c0_i32, %c0_i32_0 : i32, i32, i32
  }
}

</mosaic_0001>

<bundles_post_ra>
// kernel: molecular_crystal_graph_forward.1
= control target key start
LH: loop header
LB: loop body
LE: loop exit
PB: predicated region body
PF: predicated region fallthrough
CT: control target
= control target key end

     0   :  { %s2373_s27 = smov 0   ;;  %s2677_s0 = inlined_call_operand.vmem [shape: s32[4,1,48], index: 0, kind: input, shape index: {}]   ;;  %s2678_s1 = inlined_call_operand.vmem [shape: s32[4,48,1], index: 1, kind: input, shape index: {}]   ;;  %s2679_s2 = inlined_call_operand.vmem [shape: f32[4,48,4], index: 2, kind: input, shape index: {}]   ;;  %s2680_s3 = inlined_call_operand.vmem [shape: f32[4,8,4], index: 3, kind: input, shape index: {}]   ;;  %s2681_s4 = inlined_call_operand.vmem [shape: f32[4,32], index: 4, kind: input, shape index: {}]   ;;  %s2682_s5 = inlined_call_operand.vmem [shape: f32[1,32], index: 5, kind: input, shape index: {}]   ;;  %s2683_s6 = inlined_call_operand.vmem [shape: f32[1,32], index: 6, kind: input, shape index: {}]   ;;  %s2684_s7 = inlined_call_operand.vmem [shape: f32[1,32], index: 7, kind: input, shape index: {}]   ;;  %s2685_s8 = inlined_call_operand.vmem [shape: f32[4,4], index: 8, kind: input, shape index: {}]   ;;  %s2686_s9 = inlined_call_operand.vmem [shape: f32[1,4], index: 9, kind: input, shape index: {}]   ;;  %s2687_s10 = inlined_call_operand.vmem [shape: f32[32,32], index: 10, kind: input, shape index: {}]   ;;  %s2688_s11 = inlined_call_operand.vmem [shape: f32[4,32], index: 11, kind: input, shape index: {}]   ;;  %s2689_s12 = inlined_call_operand.vmem [shape: f32[1,32], index: 12, kind: input, shape index: {}]   ;;  %s2690_s13 = inlined_call_operand.vmem [shape: f32[32,32], index: 13, kind: input, shape index: {}]   ;;  %s2691_s14 = inlined_call_operand.vmem [shape: f32[1,32], index: 14, kind: input, shape index: {}]   ;;  %s2692_s15 = inlined_call_operand.vmem [shape: f32[32,32], index: 15, kind: input, shape index: {}]   ;;  %s2693_s16 = inlined_call_operand.vmem [shape: f32[1,32], index: 16, kind: input, shape index: {}]   ;;  %s2694_s17 = inlined_call_operand.vmem [shape: f32[32,128], index: 17, kind: input, shape index: {}]   ;;  %s2695_s18 = inlined_call_operand.vmem [shape: f32[4,8,128], index: 18, kind: output, shape index: {}]  }
   0x1   :  { %2696 = sst [smem:[#allocation2_spill]] %s2677_s0 }
   0x2   :  { %2697 = sst [smem:[#allocation3_spill]] %s2678_s1 }
   0x3   :  { %2698 = sst [smem:[#allocation4_spill]] %s2679_s2 }
   0x4 LB: > { %s1962_s28 = sadd.s32 4294967295, %s2273_s27   ;;  %p1966_p0 = scmp.ge.s32.totalorder %s2273_s27, 1  ;;  %s2273_s27 = sphi %s2373_s27, %s28_s27  }
   0x5   : > { %p539_p1 = scmp.lt.s32.totalorder %s2273_s27, 5 }
   0x7   : > { %p540_p2 = pnand %p1966_p0, %p539_p1 }
   0x8   : > { %p604_p3 = scmp.lt.s32.totalorder (!%p540_p2), %s1962_s28, 3  ;;  %s2699_s20 = sld [smem:[#allocation4_spill]] (!%p540_p2) }
   0x9   : > { %543 = sbr.rel (%p540_p2) target bundleno = 2179 (0x883), region = 92  ;;  %s2700_s23 = sld [smem:[#allocation2_spill]] (!%p540_p2) }
   0xa   : > { %s2701_s29 = sld [smem:[#allocation3_spill]] (!%p540_p2) }
   0xe   : > { %v631_v0 = vld [vmem:[%s2681_s4] sm:$0xf]  ;;  %vm658_vm0 = vcmask 1043456   ;;  %s2703_s28 = smov (!%p604_p3, %s1962_s28), 3  ;;  %vm639_vm1 = vcmask 31744   ;;  %v2275_v7 = vmov 0.0   ;;  %v818_v8 = vlaneseq }
   0xf   : > { %2077 = vmatprep.subr.msk.mxu0 %vm658_vm0, %v631_v0  ;;  %s2209_s0 = smul.u32 48, %s2703_s28  ;;  %2088 = vmatprep.subr.mxu1 %v2275_v7  ;;  %s606_s24 = scalar_lea.vmem %s2700_s23, %s2703_s28  ;;  %vm2276_vm3 = vmmov 0   ;;  %vm872_vm4 = vcmask 392192   ;;  %v2277_v13 = vmov 0   ;;  %v1971_v20 = vld [vmem:[%s2682_s5] ss:$0 sm:$0xff] }
  0x10   : > { %2078 = vmatpush3.msk.msra.mxu0 %vm658_vm0, %v631_v0  ;;  %v819_v9 = vshrl.u32 %v818_v8, 7  ;;  %v1979_v10 = vld [vmem:[%s606_s24] ss:$0 sm:$0xff]  ;;  %2100 = vmatprep.mubr.msk.f32.mxu1 %vm2276_vm3, %v2275_v7  ;;  %vm952_vm6 = vcmask 64512   ;;  %vm1521_vm12 = vcmask 261120  }
  0x11   : > { %s616_s21 = scalar_lea.vmem %s2699_s20, %s2209_s0  ;;  %s611_s30 = scalar_lea.vmem %s2701_s29, %s2209_s0  ;;  %2222 = vset.pattern.permute.xlu1 %v2277_v13  ;;  %2221 = vset.pattern.permute.xlu0 %v2277_v13 }
  0x12   : > { %v625_v1 = vld [vmem:[%s616_s21] sm:$0xff]  ;;  %v626_v2 = vld [vmem:[%s616_s21 + $0x8] sm:$0xff]  ;;  %v627_v3 = vld [vmem:[%s616_s21 + $0x10] sm:$0xff]  ;;  %vm826_vm2 = vcmp.eq.s32.totalorder %v1979_v10, %v819_v9 }
  0x13   : > { %2079 = vmatprep.mubr.msk.f32.mxu0 %vm639_vm1, %v625_v1  ;;  %v628_v4 = vld [vmem:[%s616_s21 + $0x18] sm:$0xff]  ;;  %v629_v5 = vld [vmem:[%s616_s21 + $0x20] sm:$0xff]  ;;  %v630_v6 = vld [vmem:[%s616_s21 + $0x28] sm:$0xff]  ;;  %v2407_v11 = vsel %vm826_vm2, 1.0, %v2275_v7  ;;  %s1969_s21 = sshll.u32 %s2703_s28, 3 }
  0x14   : > { %2080 = vmatmul.mubr.msk.f32.vlgmr.msra.gmra.mxu0 %vm639_vm1, %v626_v2  ;;  %v873_v12 = vsel %vm872_vm4, %v2407_v11, 0.0  ;;  %v813_v14 = vld [vmem:[%s611_s30 + $0x8] sm:$0xff]  ;;  %v814_v15 = vld [vmem:[%s611_s30 + $0x10] sm:$0xff]  ;;  %v815_v16 = vld [vmem:[%s611_s30 + $0x18] sm:$0xff]  ;;  %s620_s25 = scalar_lea.vmem %s2680_s3, %s1969_s21  ;;  %s624_s24 = scalar_lea.vmem %s2695_s18, %s1969_s21 }
  0x15   : > { %2082 = vmatprep.mubr.msk.f32.mxu0 %vm639_vm1, %v627_v3  ;;  %874 = vadd.xlane.f32.xlu0 %v873_v12  ;;  %v816_v17 = vld [vmem:[%s611_s30 + $0x20] sm:$0xff]  ;;  %v817_v18 = vld [vmem:[%s611_s30 + $0x28] sm:$0xff] }
  0x16   : > { %832 = vperm.xlu1 %2222, %v813_v14   ;;  %v812_v19 = vld [vmem:[%s611_s30] sm:$0xff] }
  0x18   : > { %2083 = vmatmul.mubr.msk.f32.gmra.mxu0 %vm639_vm1, %v628_v4 }
  0x19   : > { %2085 = vmatprep.mubr.msk.f32.mxu0 %vm639_vm1, %v629_v5 }
  0x1a   : > { %835 = vperm.xlu1 %2222, %v814_v15  }
  0x1c   : > { %2086 = vmatmul.mubr.msk.f32.gmra.mxu0 %vm639_vm1, %v630_v6 }
  0x1e   : > { %838 = vperm.xlu1 %2222, %v815_v16   ;;  %v1980_v16 = vld [vmem:[%s2683_s6] ss:$0 sm:$0xff] }
  0x22   : > { %841 = vperm.xlu1 %2222, %v816_v17  }
  0x26   : > { %844 = vperm.xlu1 %2222, %v817_v18  }
  0x2b   : > { %829 = vperm.xlu0 %2221, %v812_v19  }
  0xd4   : > { %v2081_v21 = vpop.f32.mrf.mxu0 }
  0xd5   : > { %v2417_v22 = vadd.f32 %v2081_v21, %v1971_v20 }
  0xd6   : > { %v728_v23 = vpop.f32.mrf.mxu0 }
  0xd7   : > { %v764_v24 = vmul.f32 0.044715, %v2417_v22  ;;  %v2420_v25 = vadd.f32 %v1971_v20, %v728_v23 }
  0xd8   : > { %v2084_v26 = vpop.f32.mrf.mxu0 }
  0xd9   : > { %v763_v27 = vmul.f32 0.044715, %v2420_v25  ;;  %v744_v28 = vadd.f32 %v2084_v26, %v1971_v20  ;;  %v770_v29 = vmul.f32 %v764_v24, %v2417_v22  ;;  %v758_v26 = vmul.f32 0.5, %v2417_v22 }
  0xda   : > { %v738_v30 = vpop.f32.mrf.mxu0 }
  0xdb   : > { %v766_v31 = vmul.f32 0.044715, %v744_v28  ;;  %v739_v32 = vadd.f32 %v1971_v20, %v738_v30  ;;  %v769_v34 = vmul.f32 %v763_v27, %v2420_v25  ;;  %v776_v38 = vmul.f32 %v770_v29, %v2417_v22 }
  0xdc   : > { %v2087_v33 = vpop.f32.mrf.mxu0  ;;  %v760_v9 = vmul.f32 0.5, %v744_v28  ;;  %v757_v30 = vmul.f32 0.5, %v2420_v25 }
  0xdd   : > { %v772_v35 = vmul.f32 %v766_v31, %v744_v28  ;;  %v765_v36 = vmul.f32 0.044715, %v739_v32  ;;  %v754_v37 = vadd.f32 %v2087_v33, %v1971_v20  ;;  %v775_v44 = vmul.f32 %v769_v34, %v2420_v25  ;;  %v875_v33 = vpop.xlane.xlu0 %874 }
  0xde   : > { %v748_v39 = vpop.f32.mrf.mxu0  ;;  %v782_v49 = vadd.f32 %v776_v38, %v2417_v22  ;;  %v759_v17 = vmul.f32 0.5, %v739_v32  ;;  %v821_v34 = vand.u32 127, %v818_v8  ;;  %v833_v38 = vpop.permute.xlu1 %832 }
  0xdf   : > { %v778_v40 = vmul.f32 %v772_v35, %v744_v28  ;;  %v771_v41 = vmul.f32 %v765_v36, %v739_v32  ;;  %v768_v42 = vmul.f32 0.044715, %v754_v37  ;;  %v749_v43 = vadd.f32 %v1971_v20, %v748_v39 }
  0xe0   : > { %v781_v57 = vadd.f32 %v775_v44, %v2420_v25  ;;  %v788_v58 = vmul.f32 0.7978846, %v782_v49  ;;  %v762_v3 = vmul.f32 0.5, %v754_v37  ;;  %vm847_vm7 = vcmp.eq.s32.totalorder %v833_v38, %v821_v34 }
  0xe1   : > { %v777_v45 = vmul.f32 %v771_v41, %v739_v32  ;;  %v774_v46 = vmul.f32 %v768_v42, %v754_v37  ;;  %v767_v47 = vmul.f32 0.044715, %v749_v43  ;;  %v784_v48 = vadd.f32 %v778_v40, %v744_v28  ;;  %v830_v35 = vpop.permute.xlu0 %829 }
  0xe2   : > { %v787_v62 = vmul.f32 0.7978846, %v781_v57  ;;  %v761_v12 = vmul.f32 0.5, %v749_v43  ;;  %vm846_vm5 = vcmp.eq.s32.totalorder %v830_v35, %v821_v34  ;;  %v836_v39 = vpop.permute.xlu1 %835  ;;  %v2481_v8 = vsel %vm847_vm7, 1.0, %v2275_v7 }
  0xe3   : > { %v773_v50 = vmul.f32 %v767_v47, %v749_v43  ;;  %v780_v51 = vmul.f32 %v774_v46, %v754_v37  ;;  %v783_v52 = vadd.f32 %v777_v45, %v739_v32  ;;  %v790_v53 = vmul.f32 0.7978846, %v784_v48 }
  0xe4   : > { %v852_v36 = vsel %vm846_vm5, 1.0, %v2275_v7  ;;  %vm848_vm8 = vcmp.eq.s32.totalorder %v836_v39, %v821_v34 }
  0xe5   : > { %v779_v54 = vmul.f32 %v773_v50, %v749_v43  ;;  %v786_v55 = vadd.f32 %v780_v51, %v754_v37  ;;  %v789_v56 = vmul.f32 0.7978846, %v783_v52  ;;  %2223 = vtanh.f32 %v790_v53  ;;  %2105 = vmatprep.mubr.msk.f32.mxu0 %vm952_vm6, %v852_v36 }
  0xe6   : > { %v876_v37 = vmax.f32 %v875_v33, 1.0  ;;  %v839_v40 = vpop.permute.xlu1 %838  ;;  %v2484_v46 = vsel %vm848_vm8, 1.0, %v2275_v7 }
  0xe7   : > { %v792_v59 = vmul.f32 0.7978846, %v786_v55  ;;  %v785_v60 = vadd.f32 %v779_v54, %v749_v43  ;;  %2225 = vtanh.f32 %v789_v56  ;;  %vm849_vm9 = vcmp.eq.s32.totalorder %v839_v40, %v821_v34 }
  0xe8   : > { %v2491_v48 = vsel %vm849_vm9, 1.0, %v2275_v7 }
  0xe9   : > { %2227 = vtanh.f32 %v792_v59  ;;  %v791_v61 = vmul.f32 0.7978846, %v785_v60 }
  0xea   : > { %2229 = vtanh.f32 %v788_v58  ;;  %v842_v42 = vpop.permute.xlu1 %841 }
  0xeb   : > { %2231 = vtanh.f32 %v791_v61  ;;  %vm850_vm10 = vcmp.eq.s32.totalorder %v842_v42, %v821_v34 }
  0xec   : > { %2233 = vtanh.f32 %v787_v62  ;;  %v2494_v49 = vsel %vm850_vm10, 1.0, %v2275_v7 }
  0xed   : > { %2235 = vrcp.f32 %v876_v37 }
  0xee   : > { %v845_v47 = vpop.permute.xlu1 %844 }
  0xef   : > { %vm851_vm11 = vcmp.eq.s32.totalorder %v845_v47, %v821_v34 }
  0xf0   : > { %v857_v50 = vsel %vm851_vm11, 1.0, %v2275_v7 }
  0xf2   : > { %v2224_v63 = vpop.eup %2223 }
  0xf3   : > { %v802_v5 = vadd.f32 1.0, %v2224_v63 }
  0xf4   : > { %v2226_v0 = vpop.eup %2225 }
  0xf5   : > { %v801_v14 = vadd.f32 1.0, %v2226_v0  ;;  %v2439_v20 = vmul.f32 %v802_v5, %v760_v9 }
  0xf6   : > { %v2228_v1 = vpop.eup %2227 }
  0xf7   : > { %v2230_v2 = vpop.eup %2229  ;;  %v804_v4 = vadd.f32 1.0, %v2228_v1  ;;  %v2445_v24 = vmul.f32 %v801_v14, %v759_v17  ;;  %v2451_v28 = vmul.f32 %v1980_v16, %v2439_v20 }
  0xf8   : > { %v2232_v6 = vpop.eup %2231  ;;  %v800_v21 = vadd.f32 1.0, %v2230_v2 }
  0xf9   : > { %v2429_v10 = vmul.f32 %v804_v4, %v762_v3  ;;  %v803_v13 = vadd.f32 1.0, %v2232_v6  ;;  %v2234_v15 = vpop.eup %2233  ;;  %v2459_v31 = vmul.f32 %v1980_v16, %v2445_v24 }
  0xfa   : > { %v799_v27 = vadd.f32 1.0, %v2234_v15  ;;  %v2453_v29 = vmul.f32 %v800_v21, %v758_v26  ;;  %v2236_v41 = vpop.eup %2235 }
  0xfb   : > { %v2435_v18 = vmul.f32 %v1980_v16, %v2429_v10  ;;  %v2437_v19 = vmul.f32 %v803_v13, %v761_v12 }
  0xfc   : > { %v2461_v22 = vmul.f32 %v799_v27, %v757_v30  ;;  %v867_v32 = vmul.f32 %v1980_v16, %v2453_v29  ;;  %v1355_v30 = vld [vmem:[%s620_s25] sm:$0xff] }
  0xfd   : > { %2089 = vmatpush3.msra.mxu1 %v2435_v18  ;;  %v2443_v23 = vmul.f32 %v1980_v16, %v2437_v19 }
  0xfe   : > { %2090 = vmatprep.subr.mxu1 %v2275_v7  ;;  %v2468_v25 = vmul.f32 %v1980_v16, %v2461_v22 }
  0xff   : > { %2091 = vmatpush3.msra.mxu1 %v2443_v23 }
 0x100   : > { %2092 = vmatprep.subr.mxu1 %v2275_v7 }
 0x101   : > { %2093 = vmatpush3.msra.mxu1 %v2451_v28 }
 0x102   : > { %2094 = vmatprep.subr.mxu1 %v2275_v7 }
 0x103   : > { %2095 = vmatpush3.msra.mxu1 %v2459_v31 }
 0x104   : > { %2096 = vmatprep.subr.mxu1 %v2275_v7 }
 0x105   : > { %2097 = vmatpush3.msra.mxu1 %v867_v32 }
 0x106   : > { %2098 = vmatprep.subr.mxu1 %v2275_v7 }
 0x107   : > { %2099 = vmatpush3.msra.mxu1 %v2468_v25 }
 0x108   : > { %2101 = vmatmul.mubr.msk.f32.vlgmr.msra.gmra.mxu1 %vm872_vm4, %v2407_v11  ;;  %2114 = vmatprep.subr.mxu1 %v2275_v7 }
 0x109   : > { %2126 = vmatprep.mubr.msk.f32.mxu1 %vm2276_vm3, %v2275_v7 }
 0x1c8   : > { %v946_v43 = vpop.f32.mrf.mxu1 }
 0x1c9   : > { %v951_v44 = vmul.f32 %v2236_v41, %v946_v43 }
 0x1ca   : > { %v2102_v45 = vpop.f32.mrf.mxu1 }
 0x1cb   : > { %2103 = vmatprep.subr.mxu0 %v951_v44 }
 0x1cc   : > { %2104 = vmatpush3.msra.mxu0 %v951_v44 }
 0x1cd   : > { %2106 = vmatmul.mubr.msk.f32.vlgmr.msra.gmra.mxu0 %vm952_vm6, %v2481_v8 }
 0x1ce   : > { %2108 = vmatprep.mubr.msk.f32.mxu0 %vm952_vm6, %v2484_v46 }
 0x1d1   : > { %2109 = vmatmul.mubr.msk.f32.gmra.mxu0 %vm952_vm6, %v2491_v48 }
 0x1d2   : > { %2111 = vmatprep.mubr.msk.f32.mxu0 %vm952_vm6, %v2494_v49 }
 0x1d5   : > { %2112 = vmatmul.mubr.msk.f32.gmra.mxu0 %vm952_vm6, %v857_v50 }
 0x1d6   : > { %2131 = vmatprep.mubr.msk.f32.mxu0 %vm952_vm6, %v852_v36 }
 0x28d   : > { %v2107_v51 = vpop.f32.mrf.mxu0 }
 0x28e   : > { %v1067_v60 = vsub.f32 %v867_v32, %v2107_v51  ;;  %v1442_v32 = vld [vmem:[%s2687_s10 + $0x10] sm:$0xff] }
 0x28f   : > { %v1037_v52 = vpop.f32.mrf.mxu0 }
 0x290   : > { %v1066_v0 = vsub.f32 %v2468_v25, %v1037_v52  ;;  %v1073_v4 = vmin.f32 %v1067_v60, 60.0  ;;  %v1441_v25 = vld [vmem:[%s2687_s10 + $0x8] sm:$0xff] }
 0x291   : > { %v2110_v53 = vpop.f32.mrf.mxu0 }
 0x292   : > { %v1069_v55 = vsub.f32 %v2451_v28, %v2110_v53  ;;  %v1072_v9 = vmin.f32 %v1066_v0, 60.0  ;;  %v1080_v13 = vmul.f32 1.442695, %v1073_v4  ;;  %v1356_v28 = vld [vmem:[%s2685_s8] sm:$0xf]  ;;  %v1613_v4 = vld [vmem:[%s2690_s13 + $0x8] sm:$0xff] }
 0x293   : > { %v1047_v54 = vpop.f32.mrf.mxu0 }
 0x294   : > { %v1068_v57 = vsub.f32 %v2459_v31, %v1047_v54  ;;  %v1075_v61 = vmin.f32 %v1069_v55, 60.0  ;;  %v1078_v14 = vmul.f32 1.442695, %v1072_v9  ;;  %v1443_v31 = vld [vmem:[%s2687_s10 + $0x18] sm:$0xff]  ;;  %v2003_v9 = vld [vmem:[%s2689_s12] ss:$0 sm:$0xff] }
 0x295   : > { %v2113_v56 = vpop.f32.mrf.mxu0 }
 0x296   : > { %v1071_v58 = vsub.f32 %v2435_v18, %v2113_v56  ;;  %v1074_v1 = vmin.f32 %v1068_v57, 60.0  ;;  %v1084_v5 = vmul.f32 1.442695, %v1075_v61 }
 0x297   : > { %v1057_v59 = vpop.f32.mrf.mxu0 }
 0x298   : > { %v1077_v62 = vmin.f32 %v1071_v58, 60.0  ;;  %v1070_v63 = vsub.f32 %v2443_v23, %v1057_v59  ;;  %v1082_v12 = vmul.f32 1.442695, %v1074_v1 }
 0x29a   : > { %v1088_v2 = vmul.f32 1.442695, %v1077_v62  ;;  %v1076_v3 = vmin.f32 %v1070_v63, 60.0 }
 0x29c   : > { %2237 = vpow2.f32 %v1088_v2  ;;  %v1086_v6 = vmul.f32 1.442695, %v1076_v3  ;;  %v1615_v2 = vld [vmem:[%s2690_s13 + $0x18] sm:$0xff]  ;;  %v1614_v3 = vld [vmem:[%s2690_s13 + $0x10] sm:$0xff] }
 0x29e   : > { %2239 = vpow2.f32 %v1086_v6 }
 0x29f   : > { %2241 = vpow2.f32 %v1084_v5  ;;  %v1612_v5 = vld [vmem:[%s2690_s13] sm:$0xff] }
 0x2a0   : > { %2243 = vpow2.f32 %v1082_v12 }
 0x2a1   : > { %2245 = vpow2.f32 %v1080_v13 }
 0x2a2   : > { %2247 = vpow2.f32 %v1078_v14 }
 0x2a9   : > { %v2508_v15 = vpop.eup %2237 }
 0x2aa   : > { %2115 = vmatpush3.msra.mxu1 %v2508_v15 }
 0x2ab   : > { %v2511_v16 = vpop.eup %2239  ;;  %2116 = vmatprep.subr.mxu1 %v2275_v7 }
 0x2ac   : > { %2117 = vmatpush3.msra.mxu1 %v2511_v16  ;;  %v2242_v17 = vpop.eup %2241 }
 0x2ad   : > { %2118 = vmatprep.subr.mxu1 %v2275_v7  ;;  %v2244_v18 = vpop.eup %2243 }
 0x2ae   : > { %2119 = vmatpush3.msra.mxu1 %v2242_v17  ;;  %v2517_v21 = vpop.eup %2245 }
 0x2af   : > { %2120 = vmatprep.subr.mxu1 %v2275_v7  ;;  %v2521_v23 = vpop.eup %2247 }
 0x2b0   : > { %2121 = vmatpush3.msra.mxu1 %v2244_v18 }
 0x2b1   : > { %2122 = vmatprep.subr.mxu1 %v2275_v7 }
 0x2b2   : > { %2123 = vmatpush3.msra.mxu1 %v2517_v21 }
 0x2b3   : > { %2124 = vmatprep.subr.mxu1 %v2275_v7 }
 0x2b4   : > { %2125 = vmatpush3.msra.mxu1 %v2521_v23 }
 0x2b5   : > { %2127 = vmatmul.mubr.msk.f32.vlgmr.msra.gmra.mxu1 %vm872_vm4, %v2407_v11  ;;  %2140 = vmatprep.subr.mxu1 %v2275_v7 }
 0x2b6   : > { %2152 = vmatprep.mubr.msk.f32.mxu1 %vm2276_vm3, %v2275_v7 }
 0x375   : > { %v1156_v26 = vpop.f32.mrf.mxu1 }
 0x376   : > { %2129 = vmatprep.subr.mxu0 %v1156_v26 }
 0x377   : > { %v2128_v27 = vpop.f32.mrf.mxu1  ;;  %2130 = vmatpush3.msra.mxu0 %v1156_v26 }
 0x378   : > { %2132 = vmatmul.mubr.msk.f32.vlgmr.msra.gmra.mxu0 %vm952_vm6, %v2481_v8  ;;  %2155 = vmatprep.subr.mxu0 %v2275_v7  ;;  %v1995_v8 = vld [vmem:[%s2684_s7] ss:$0 sm:$0xff] }
 0x379   : > { %2134 = vmatprep.mubr.msk.f32.mxu0 %vm952_vm6, %v2484_v46  ;;  %2156 = vmatpush3.msk.msra.mxu0 %vm658_vm0, %v1356_v28 }
 0x37a   : > { %2165 = vmatprep.subr.mxu0 %v2275_v7 }
 0x37c   : > { %2135 = vmatmul.mubr.msk.f32.gmra.mxu0 %vm952_vm6, %v2491_v48 }
 0x37d   : > { %2137 = vmatprep.mubr.msk.f32.mxu0 %vm952_vm6, %v2494_v49 }
 0x380   : > { %2138 = vmatmul.mubr.msk.f32.gmra.mxu0 %vm952_vm6, %v857_v50 }
 0x381   : > { %2157 = vmatprep.mubr.msk.f32.mxu0 %vm2276_vm3, %v2275_v7 }
 0x384   : > { %2158 = vmatmul.mubr.msk.f32.vlgmr.msra.gmra.mxu0 %vm639_vm1, %v1355_v30  ;;  %v1708_v30 = vld [vmem:[%s2692_s15 + $0x18] sm:$0xff] }
 0x385   : > { %2173 = vmatprep.mubr.msk.f32.mxu0 %vm2276_vm3, %v2275_v7  ;;  %2166 = vmatpush3.msra.mxu0 %v1443_v31  ;;  %v1707_v31 = vld [vmem:[%s2692_s15 + $0x10] sm:$0xff] }
 0x386   : > { %2167 = vmatprep.subr.mxu0 %v2275_v7 }
 0x387   : > { %2168 = vmatpush3.msra.mxu0 %v1442_v32  ;;  %v1706_v32 = vld [vmem:[%s2692_s15 + $0x8] sm:$0xff] }
 0x388   : > { %2169 = vmatprep.subr.mxu0 %v2275_v7 }
 0x389   : > { %2170 = vmatpush3.msra.mxu0 %v1441_v25  ;;  %v1705_v25 = vld [vmem:[%s2692_s15] sm:$0xff] }
 0x38a   : > { %2171 = vmatprep.subr.mxu0 %v2275_v7 }
 0x438   : > { %v2133_v33 = vpop.f32.mrf.mxu0 }
 0x43a   : > { %v1226_v34 = vpop.f32.mrf.mxu0 }
 0x43c   : > { %v2136_v35 = vpop.f32.mrf.mxu0 }
 0x43d   : > { %2249 = vrcp.f32 %v2136_v35 }
 0x43e   : > { %v1236_v36 = vpop.f32.mrf.mxu0 }
 0x43f   : > { %2251 = vrcp.f32 %v1236_v36 }
 0x440   : > { %v2139_v37 = vpop.f32.mrf.mxu0 }
 0x441   : > { %2253 = vrcp.f32 %v2139_v37 }
 0x442   : > { %2255 = vrcp.f32 %v2133_v33  ;;  %v1246_v38 = vpop.f32.mrf.mxu0  ;;  %v2004_v33 = vld [vmem:[%s2691_s14] ss:$0 sm:$0xff] }
 0x443   : > { %2257 = vrcp.f32 %v1246_v38 }
 0x444   : > { %2259 = vrcp.f32 %v1226_v34 }
 0x44a   : > { %v2250_v39 = vpop.eup %2249 }
 0x44b   : > { %v1264_v44 = vmul.f32 %v2250_v39, %v2242_v17 }
 0x44c   : > { %v2252_v40 = vpop.eup %2251 }
 0x44d   : > { %v1263_v48 = vmul.f32 %v2252_v40, %v2244_v18  ;;  %v1276_v52 = vadd.f32 %v1995_v8, %v1264_v44 }
 0x44e   : > { %v2254_v41 = vpop.eup %2253 }
 0x44f   : > { %v2256_v42 = vpop.eup %2255  ;;  %v1266_v43 = vmul.f32 %v2254_v41, %v2508_v15  ;;  %v1275_v55 = vadd.f32 %v1995_v8, %v1263_v48  ;;  %v1282_v57 = vmul.f32 %v1276_v52, %v2439_v20  ;;  %v1997_v20 = vld [vmem:[%s2686_s9] ss:$0 sm:$0xff] }
 0x450   : > { %v2258_v45 = vpop.eup %2257  ;;  %v1262_v53 = vmul.f32 %v2256_v42, %v2517_v21  ;;  %v1798_v48 = vld [vmem:[%s2694_s17] sm:$0xff] }
 0x451   : > { %v1278_v46 = vadd.f32 %v1995_v8, %v1266_v43  ;;  %v1265_v47 = vmul.f32 %v2258_v45, %v2511_v16  ;;  %v2260_v49 = vpop.eup %2259 }
 0x452   : > { %v1261_v56 = vmul.f32 %v2260_v49, %v2521_v23  ;;  %v1274_v58 = vadd.f32 %v1995_v8, %v1262_v53  ;;  %v2006_v49 = vld [vmem:[%s2693_s16] ss:$0 sm:$0xff] }
 0x453   : > { %v1284_v50 = vmul.f32 %v1278_v46, %v2429_v10  ;;  %v1277_v51 = vadd.f32 %v1995_v8, %v1265_v47  ;;  %v1281_v10 = vmul.f32 %v1275_v55, %v2445_v24  ;;  %v1436_v24 = vpop.f32.mrf.mxu0  ;;  %v1800_v46 = vld [vmem:[%s2694_s17 + $0x10] sm:$0xff]  ;;  %v1799_v47 = vld [vmem:[%s2694_s17 + $0x8] sm:$0xff] }
 0x454   : > { %v1273_v59 = vadd.f32 %v1995_v8, %v1261_v56  ;;  %v1801_v8 = vld [vmem:[%s2694_s17 + $0x18] sm:$0xff] }
 0x455   : > { %2141 = vmatpush3.msra.mxu1 %v1284_v50  ;;  %v1283_v54 = vmul.f32 %v1277_v51, %v2437_v19  ;;  %v1280_v19 = vmul.f32 %v1274_v58, %v2453_v29  ;;  %v1437_v29 = vadd.f32 %v1997_v20, %v1436_v24  ;;  %v2159_v61 = vpop.f32.mrf.mxu0 }
 0x456   : > { %2142 = vmatprep.subr.mxu1 %v2275_v7  ;;  %v1279_v60 = vmul.f32 %v1273_v59, %v2461_v22  ;;  %v1444_v22 = vld [vmem:[%s2688_s11] sm:$0xf] }
 0x457   : > { %2143 = vmatpush3.msra.mxu1 %v1283_v54 }
 0x458   : > { %2144 = vmatprep.subr.mxu1 %v2275_v7 }
 0x459   : > { %2145 = vmatpush3.msra.mxu1 %v1282_v57 }
 0x45a   : > { %2146 = vmatprep.subr.mxu1 %v2275_v7 }
 0x45b   : > { %2147 = vmatpush3.msra.mxu1 %v1281_v10 }
 0x45c   : > { %2148 = vmatprep.subr.mxu1 %v2275_v7 }
 0x45d   : > { %2149 = vmatpush3.msra.mxu1 %v1280_v19 }
 0x45e   : > { %2150 = vmatprep.subr.mxu1 %v2275_v7 }
 0x45f   : > { %2151 = vmatpush3.msra.mxu1 %v1279_v60 }
 0x460   : > { %2153 = vmatmul.mubr.msk.f32.vlgmr.msra.gmra.mxu1 %vm872_vm4, %v2407_v11  ;;  %2160 = vmatprep.subr.mxu1 %v2275_v7  ;;  %v1440_v11 = vld [vmem:[%s2687_s10] sm:$0xff] }
 0x461   : > { %2162 = vmatprep.mubr.msk.f32.mxu1 %vm2276_vm3, %v2275_v7  ;;  %2161 = vmatpush3.msk.msra.mxu1 %vm658_vm0, %v1444_v22 }
 0x462   : > { %2176 = vmatprep.subr.mxu1 %v2275_v7  ;;  %2172 = vmatpush3.msra.mxu0 %v1440_v11 }
 0x463   : > { %2187 = vmatprep.subr.mxu0 %v2275_v7 }
 0x464   : > { %2163 = vmatmul.mubr.msk.f32.vlgmr.msra.gmra.mxu1 %vm639_vm1, %v1437_v29 }
 0x465   : > { %2184 = vmatprep.mubr.msk.f32.mxu1 %vm2276_vm3, %v2275_v7  ;;  %2177 = vmatpush3.msra.mxu1 %v1615_v2 }
 0x466   : > { %2178 = vmatprep.subr.mxu1 %v2275_v7 }
 0x467   : > { %2179 = vmatpush3.msra.mxu1 %v1614_v3 }
 0x468   : > { %2180 = vmatprep.subr.mxu1 %v2275_v7 }
 0x469   : > { %2181 = vmatpush3.msra.mxu1 %v1613_v4 }
 0x46a   : > { %2182 = vmatprep.subr.mxu1 %v2275_v7 }
 0x46b   : > { %2183 = vmatpush3.msra.mxu1 %v1612_v5 }
 0x46c   : > { %2198 = vmatprep.subr.mxu1 %v2275_v7 }
 0x520   : > { %v1351_v62 = vpop.f32.mrf.mxu1 }
 0x521   : > { %2174 = vmatmul.mubr.msk.f32.vlgmr.msra.gmra.mxu0 %vm1521_vm12, %v1351_v62 }
 0x522   : > { %v2154_v63 = vpop.f32.mrf.mxu1  ;;  %2195 = vmatprep.mubr.msk.f32.mxu0 %vm2276_vm3, %v2275_v7  ;;  %2188 = vmatpush3.msra.mxu0 %v1708_v30 }
 0x523   : > { %2189 = vmatprep.subr.mxu0 %v2275_v7 }
 0x524   : > { %v1517_v0 = vpop.f32.mrf.mxu1  ;;  %2190 = vmatpush3.msra.mxu0 %v1707_v31 }
 0x525   : > { %2191 = vmatprep.subr.mxu0 %v2275_v7 }
 0x526   : > { %v2164_v1 = vpop.f32.mrf.mxu1  ;;  %2192 = vmatpush3.msra.mxu0 %v1706_v32 }
 0x527   : > { %2193 = vmatprep.subr.mxu0 %v2275_v7 }
 0x528   : > { %2194 = vmatpush3.msra.mxu0 %v1705_v25 }
 0x5e1   : > { %v1591_v6 = vpop.f32.mrf.mxu0 }
 0x5e2   : > { %v1592_v12 = vadd.f32 %v1591_v6, %v1517_v0 }
 0x5e3   : > { %v2175_v13 = vpop.f32.mrf.mxu0 }
 0x5e4   : > { %v1602_v14 = vadd.f32 %v2003_v9, %v1592_v12 }
 0x5e6   : > { %v1604_v15 = vmul.f32 0.044715, %v1602_v14  ;;  %v1603_v26 = vmul.f32 0.5, %v1602_v14 }
 0x5e8   : > { %v1605_v16 = vmul.f32 %v1604_v15, %v1602_v14 }
 0x5ea   : > { %v1606_v17 = vmul.f32 %v1605_v16, %v1602_v14 }
 0x5ec   : > { %v1607_v18 = vadd.f32 %v1606_v17, %v1602_v14 }
 0x5ee   : > { %v1608_v21 = vmul.f32 0.7978846, %v1607_v18 }
 0x5f0   : > { %2261 = vtanh.f32 %v1608_v21 }
 0x5fd   : > { %v2262_v23 = vpop.eup %2261 }
 0x5fe   : > { %v1610_v27 = vadd.f32 1.0, %v2262_v23 }
 0x600   : > { %v1611_v28 = vmul.f32 %v1610_v27, %v1603_v26 }
 0x602   : > { %2185 = vmatmul.mubr.msk.f32.vlgmr.msra.gmra.mxu1 %vm1521_vm12, %v1611_v28 }
 0x603   : > { %2206 = vmatprep.mubr.msk.f32.mxu1 %vm2276_vm3, %v2275_v7  ;;  %2199 = vmatpush3.msra.mxu1 %v1801_v8 }
 0x604   : > { %2200 = vmatprep.subr.mxu1 %v2275_v7 }
 0x605   : > { %2201 = vmatpush3.msra.mxu1 %v1800_v46 }
 0x606   : > { %2202 = vmatprep.subr.mxu1 %v2275_v7 }
 0x607   : > { %2203 = vmatpush3.msra.mxu1 %v1799_v47 }
 0x608   : > { %2204 = vmatprep.subr.mxu1 %v2275_v7 }
 0x609   : > { %2205 = vmatpush3.msra.mxu1 %v1798_v48 }
 0x6c2   : > { %v1692_v34 = vpop.f32.mrf.mxu1 }
 0x6c3   : > { %v1693_v35 = vadd.f32 %v2004_v33, %v1692_v34 }
 0x6c4   : > { %v2186_v36 = vpop.f32.mrf.mxu1 }
 0x6c5   : > { %v1697_v37 = vmul.f32 0.044715, %v1693_v35  ;;  %v1696_v43 = vmul.f32 0.5, %v1693_v35 }
 0x6c7   : > { %v1698_v38 = vmul.f32 %v1697_v37, %v1693_v35 }
 0x6c9   : > { %v1699_v39 = vmul.f32 %v1698_v38, %v1693_v35 }
 0x6cb   : > { %v1700_v40 = vadd.f32 %v1699_v39, %v1693_v35 }
 0x6cd   : > { %v1701_v41 = vmul.f32 0.7978846, %v1700_v40 }
 0x6cf   : > { %2263 = vtanh.f32 %v1701_v41 }
 0x6dc   : > { %v2264_v42 = vpop.eup %2263 }
 0x6dd   : > { %v1703_v44 = vadd.f32 1.0, %v2264_v42 }
 0x6df   : > { %v1704_v45 = vmul.f32 %v1703_v44, %v1696_v43 }
 0x6e1   : > { %2196 = vmatmul.mubr.msk.f32.vlgmr.msra.gmra.mxu0 %vm1521_vm12, %v1704_v45 }
 0x7a1   : > { %v1785_v50 = vpop.f32.mrf.mxu0 }
 0x7a2   : > { %v1786_v51 = vadd.f32 %v2006_v49, %v1785_v50 }
 0x7a3   : > { %v2197_v52 = vpop.f32.mrf.mxu0 }
 0x7a4   : > { %v1790_v53 = vmul.f32 0.044715, %v1786_v51  ;;  %v1789_v10 = vmul.f32 0.5, %v1786_v51 }
 0x7a6   : > { %v1791_v54 = vmul.f32 %v1790_v53, %v1786_v51 }
 0x7a8   : > { %v1792_v55 = vmul.f32 %v1791_v54, %v1786_v51 }
 0x7aa   : > { %v1793_v56 = vadd.f32 %v1792_v55, %v1786_v51 }
 0x7ac   : > { %v1794_v57 = vmul.f32 0.7978846, %v1793_v56 }
 0x7ae   : > { %2265 = vtanh.f32 %v1794_v57 }
 0x7bb   : > { %v2266_v58 = vpop.eup %2265 }
 0x7bc   : > { %v1796_v59 = vadd.f32 1.0, %v2266_v58 }
 0x7be   : > { %v1797_v19 = vmul.f32 %v1796_v59, %v1789_v10 }
 0x7c0   : > { %2207 = vmatmul.mubr.msk.f32.vlgmr.msra.gmra.mxu1 %vm1521_vm12, %v1797_v19 }
 0x880   : > { %v1871_v7 = vpop.f32.mrf.mxu1 }
 0x881   : > { %1875 = vst [vmem:[%s624_s24] sm:$0xff] %v1871_v7 }
 0x882   : > { %v2208_v60 = vpop.f32.mrf.mxu1 }
 0x883 PF: > { %s28_s27 = sadd.s32 1, %s2273_s27  }
 0x884   : > { %p25_p4 = scmp.ge.s32.totalorder %s28_s27, 6  }
 0x886   :  { %27 = sbr.rel (!%p25_p4) target bundleno = 4 (0x4), region = 131 }

</bundles_post_ra>
